<compile_context>
chip_gen: v6e
topology: v6e:2x2x1
jax: 0.10.0
libtpu: 0.0.40
codegen_flags: <defaults>
</compile_context>

<pallas_src>
import jax
import jax.numpy as jnp
from jax.experimental import pallas as pl
from jax.experimental.pallas import tpu as pltpu


def _round_up(n, m):
    return ((n + m - 1) // m) * m


def bgru_kernel(x_ref, wih_ref, bg_ref, wo_ref, bo_ref, out_ref):
    """One batch tile of the BGRU forward (seq_len == 1, inference only).

    x_ref   : (bb, D)   f32     input embeddings (cast to bf16 in-kernel)
    wih_ref : (D, 6H)   bf16    fused fwd+bwd GRU input weights,
                                columns [r_f|r_b | z_f|z_b | n_f|n_b]
    bg_ref  : (4, 2H)   f32     rows: [bih_r+bhh_r, bih_z+bhh_z, bih_n, bhh_n]
                                (each row interleaved [fwd | bwd])
    wo_ref  : (2H, OUT) bf16    output Linear weight (transposed)
    bo_ref  : (1, OUT)  f32     output Linear bias
    out_ref : (bb, OUT)         output == output1 (written once)
    """
    # In-kernel VPU cast (hidden under the input DMA) instead of a wrapper
    # astype that would cost an extra HBM pass over x.
    x = x_ref[...].astype(wih_ref.dtype)
    H2 = wo_ref.shape[0]                        # 2 * gru hidden size

    # One fused MXU matmul covering both directions and all three gates.
    gi = jnp.dot(x, wih_ref[...], preferred_element_type=jnp.float32)   # (bb, 6H) f32

    b_r = bg_ref[0:1, :]          # bih_r + bhh_r (folded offline)
    b_z = bg_ref[1:2, :]          # bih_z + bhh_z
    b_in = bg_ref[2:3, :]         # bih_n
    b_hn = bg_ref[3:4, :]         # bhh_n (kept separate: it is scaled by r)

    # seq_len == 1 and h0 == 0  =>  W_hh @ h vanishes; only hidden biases survive.
    # PyTorch gate order [r, z, n]; each 2H slab is [fwd | bwd].
    r = jax.nn.sigmoid(gi[:, 0:H2] + b_r)
    z = jax.nn.sigmoid(gi[:, H2:2 * H2] + b_z)
    n = jnp.tanh(gi[:, 2 * H2:3 * H2] + b_in + r * b_hn)
    g = (1.0 - z) * n             # (bb, 2H), already laid out as [h_fwd | h_bwd]

    # SelfAttention over the length-1 sequence: softmax of a single score is
    # identically 1.0, so attention_out == g (exact); dropout is identity at
    # inference.  Hence output == output1: one Linear, one store.
    y = jnp.dot(g.astype(wo_ref.dtype), wo_ref[...],
                preferred_element_type=jnp.float32) + bo_ref[...]
    out_ref[...] = y.astype(out_ref.dtype)


def pack_params(params, compute_dtype=jnp.bfloat16):
    """Fuse fwd/bwd GRU weights gate-interleaved and pre-fold the biases."""
    wih_f, wih_b = params["wih_f"], params["wih_b"]
    H = wih_f.shape[1] // 3

    def slab(f, b, lo, hi):       # interleave the two directions for one gate
        return jnp.concatenate([f[:, lo:hi], b[:, lo:hi]], axis=-1)

    wih_fused = jnp.concatenate(
        [slab(wih_f, wih_b, 0, H),
         slab(wih_f, wih_b, H, 2 * H),
         slab(wih_f, wih_b, 2 * H, 3 * H)], axis=-1)                 # (D, 6H)

    bih_f, bih_b = params["bih_f"], params["bih_b"]
    bhh_f, bhh_b = params["bhh_f"], params["bhh_b"]
    b_r = slab(bih_f, bih_b, 0, H) + slab(bhh_f, bhh_b, 0, H)
    b_z = slab(bih_f, bih_b, H, 2 * H) + slab(bhh_f, bhh_b, H, 2 * H)
    b_in = slab(bih_f, bih_b, 2 * H, 3 * H)
    b_hn = slab(bhh_f, bhh_b, 2 * H, 3 * H)
    bias_gru = jnp.concatenate([b_r, b_z, b_in, b_hn], axis=0)       # (4, 2H)

    # NOTE: wa / ba / ua (SelfAttention) are mathematically dead for seq_len=1
    # (softmax over a single score == 1), so they are not part of the kernel.
    return {
        "wih": wih_fused.astype(compute_dtype),
        "bg": bias_gru.astype(jnp.float32),
        "wo": params["wo"].astype(compute_dtype),
        "bo": params["bo"].astype(jnp.float32),
    }


def bgru_forward(x, packed, *, block_b=1024, out_dtype=jnp.float32):
    """Returns (output, output1); they are the same array (exactly equal by
    construction for the seq_len==1 / inference forward)."""
    B, D = x.shape
    OUT = packed["wo"].shape[1]

    # Tile count: big tiles amortize the ~0.35 us/grid-step overhead, but keep
    # at least 2 "parallel" steps when there is enough work so v7x's two
    # TensorCores both participate.  bb is derived from B so padding waste is
    # bounded by ~16 rows per tile (no bb-1-row dead pads).
    n_tiles = max(pl.cdiv(B, block_b), 1)
    if n_tiles == 1 and B >= 32:
        n_tiles = 2
    bb = _round_up(pl.cdiv(B, n_tiles), 16)     # /16: bf16 sublane pack, /8 f32
    Bp = n_tiles * bb

    xp = x
    if Bp != B:                                  # tiny pad (< 16 rows per tile)
        xp = jnp.pad(x, ((0, Bp - B), (0, 0)))

    # Constant index_maps keep the weights VMEM-resident across the grid
    # (Pallas skips re-DMA when the block index is unchanged step-to-step).
    # NOTE: for very large D (e.g. ESM-2's 1280) with bb >= 2048, raise
    # pltpu.CompilerParams(vmem_limit_bytes=...) accordingly.
    const = lambda i: (0, 0)
    out = pl.pallas_call(
        bgru_kernel,
        out_shape=jax.ShapeDtypeStruct((Bp, OUT), out_dtype),
        grid=(n_tiles,),
        in_specs=[
            pl.BlockSpec((bb, D), lambda i: (i, 0)),
            pl.BlockSpec(packed["wih"].shape, const),
            pl.BlockSpec(packed["bg"].shape, const),
            pl.BlockSpec(packed["wo"].shape, const),
            pl.BlockSpec(packed["bo"].shape, const),
        ],
        out_specs=pl.BlockSpec((bb, OUT), lambda i: (i, 0)),
        compiler_params=pltpu.CompilerParams(
            dimension_semantics=("parallel",)),
    )(xp, packed["wih"], packed["bg"], packed["wo"], packed["bo"])

    out = out[:B]
    # output == output1 exactly; same buffer returned twice (callers must not
    # rely on them being distinct allocations).
    return out, out


def init_params(key, D, H, A, out_dim):
    ks = jax.random.split(key, 10)
    s_gru = 1.0 / float(H) ** 0.5
    s_lin = 1.0 / float(2 * H) ** 0.5

    def u(k, shape, s):
        return jax.random.uniform(k, shape, jnp.float32, -s, s)

    return {
        # GRU, forward direction (weights stored transposed: (D, 3H), gates [r,z,n])
        "wih_f": u(ks[0], (D, 3 * H), s_gru),
        "bih_f": u(ks[1], (1, 3 * H), s_gru),
        "bhh_f": u(ks[2], (1, 3 * H), s_gru),
        # GRU, reverse direction
        "wih_b": u(ks[3], (D, 3 * H), s_gru),
        "bih_b": u(ks[4], (1, 3 * H), s_gru),
        "bhh_b": u(ks[5], (1, 3 * H), s_gru),
        # SelfAttention params (xavier-normal W/u, zero b) — kept only for the
        # faithful reference; they have zero effect on a length-1 sequence.
        "wa": jax.random.normal(ks[6], (2 * H, A), jnp.float32) * (2.0 / (2 * H + A)) ** 0.5,
        "ba": jnp.zeros((1, A), jnp.float32),
        "ua": jax.random.normal(ks[7], (1, A), jnp.float32) * (2.0 / (A + 1)) ** 0.5,
        # output Linear(2H, out_dim), stored transposed
        "wo": u(ks[8], (2 * H, out_dim), s_lin),
        "bo": u(ks[9], (1, out_dim), s_lin),
    }


def bgru_reference(x, params):
    """Pure-JAX f32 reference, faithful to the PyTorch forward (including the
    length-1 attention/softmax that the kernel eliminates analytically)."""
    H = params["wih_f"].shape[1] // 3

    def gru_dir(wih, bih, bhh):
        gi = x @ wih + bih
        r = jax.nn.sigmoid(gi[:, :H] + bhh[:, :H])
        z = jax.nn.sigmoid(gi[:, H:2 * H] + bhh[:, H:2 * H])
        n = jnp.tanh(gi[:, 2 * H:] + r * bhh[:, 2 * H:])
        return (1.0 - z) * n

    g = jnp.concatenate(
        [gru_dir(params["wih_f"], params["bih_f"], params["bhh_f"]),
         gru_dir(params["wih_b"], params["bih_b"], params["bhh_b"])], axis=-1)
    et = jnp.tanh(g @ params["wa"] + params["ba"])            # (B, A)
    score = et @ params["ua"].T                               # (B, 1)
    at = jax.nn.softmax(score, axis=-1)                       # softmax over len-1 seq
    attn = at * g
    out = attn @ params["wo"] + params["bo"]
    out1 = g @ params["wo"] + params["bo"]
    return out, out1


if __name__ == "__main__":
    # Small shapes consistent with the module: batch=8, input_dimensions=128,
    # gru_h_size=64 (so 2H=128), attention_size=32, output_dimensions=128.
    B, D, H, A, OUT = 8, 128, 64, 32, 128
    key = jax.random.PRNGKey(0)
    kx, kp = jax.random.split(key)

    # TODO(synk): EsmEmbedding wraps a pretrained ESM-2 650M model (no Pallas
    # equivalent); the kernel consumes the (B, D) per-sequence embedding directly.
    x = jax.random.normal(kx, (B, D), jnp.float32)
    params = init_params(kp, D, H, A, OUT)
    packed = pack_params(params, compute_dtype=jnp.bfloat16)

    out, out1 = bgru_forward(x, packed)
    jax.block_until_ready((out, out1))
    assert out.shape == (B, OUT) and out1.shape == (B, OUT)

    # Sanity check against a faithful f32 reference (bf16 weights -> loose tol;
    # intentional, see packing notes).
    ref_out, ref_out1 = bgru_reference(x, params)
    assert float(jnp.max(jnp.abs(out - ref_out))) < 5e-2
    assert float(jnp.max(jnp.abs(out1 - ref_out1))) < 5e-2

    print("KERNEL_OK")
</pallas_src>

<mosaic_0001>
module attributes {stable_mosaic.version = 11 : i64} {
  func.func @bgru_kernel(%arg0: i32, %arg1: memref<16x128xf32, #tpu.memory_space<vmem>>, %arg2: memref<128x384xbf16, #tpu.memory_space<vmem>>, %arg3: memref<4x128xf32, #tpu.memory_space<vmem>>, %arg4: memref<128x128xbf16, #tpu.memory_space<vmem>>, %arg5: memref<1x128xf32, #tpu.memory_space<vmem>>, %arg6: memref<16x128xf32, #tpu.memory_space<vmem>>) attributes {dimension_semantics = [#tpu.dimension_semantics<parallel>], iteration_bounds = array<i64: 1>, scalar_prefetch = 0 : i64, scratch_operands = 0 : i64, tpu.core_type = #tpu.core_type<tc>, window_params = [{transform_indices = @transform_0, window_bounds = array<i64: 16, 128>}, {pipeline_mode = #tpu.pipeline_mode<synchronous>, transform_indices = @transform_1, window_bounds = array<i64: 128, 384>}, {pipeline_mode = #tpu.pipeline_mode<synchronous>, transform_indices = @transform_2, window_bounds = array<i64: 4, 128>}, {pipeline_mode = #tpu.pipeline_mode<synchronous>, transform_indices = @transform_3, window_bounds = array<i64: 128, 128>}, {pipeline_mode = #tpu.pipeline_mode<synchronous>, transform_indices = @transform_4, window_bounds = array<i64: 1, 128>}, {transform_indices = @transform_5, window_bounds = array<i64: 16, 128>}]} {
    %c0 = arith.constant 0 : index
    %c0_0 = arith.constant 0 : index
    %0 = vector.load %arg1[%c0, %c0_0] : memref<16x128xf32, #tpu.memory_space<vmem>>, vector<16x128xf32>
    %1 = arith.truncf %0 : vector<16x128xf32> to vector<16x128xbf16>
    %c0_1 = arith.constant 0 : index
    %c0_2 = arith.constant 0 : index
    %2 = vector.load %arg2[%c0_1, %c0_2] : memref<128x384xbf16, #tpu.memory_space<vmem>>, vector<128x384xbf16>
    %cst = arith.constant dense<0.000000e+00> : vector<16x384xf32>
    %3 = tpu.matmul %1, %2, %cst {dimension_numbers = #tpu.dot_dimension_numbers<[1], [0], [0], [1], [0, 0, 1, 1], [], []>} : vector<16x128xbf16>, vector<128x384xbf16>, vector<16x384xf32> -> vector<16x384xf32>
    %c0_3 = arith.constant 0 : index
    %c0_4 = arith.constant 0 : index
    %4 = vector.load %arg3[%c0_3, %c0_4] : memref<4x128xf32, #tpu.memory_space<vmem>>, vector<1x128xf32>
    %c1 = arith.constant 1 : index
    %c0_5 = arith.constant 0 : index
    %5 = vector.load %arg3[%c1, %c0_5] : memref<4x128xf32, #tpu.memory_space<vmem>>, vector<1x128xf32>
    %c2 = arith.constant 2 : index
    %c0_6 = arith.constant 0 : index
    %6 = vector.load %arg3[%c2, %c0_6] : memref<4x128xf32, #tpu.memory_space<vmem>>, vector<1x128xf32>
    %c3 = arith.constant 3 : index
    %c0_7 = arith.constant 0 : index
    %7 = vector.load %arg3[%c3, %c0_7] : memref<4x128xf32, #tpu.memory_space<vmem>>, vector<1x128xf32>
    %8 = vector.extract_strided_slice %3 {offsets = [0, 0], sizes = [16, 128], strides = [1, 1]} : vector<16x384xf32> to vector<16x128xf32>
    %9 = vector.broadcast %4 : vector<1x128xf32> to vector<16x128xf32>
    %10 = arith.addf %8, %9 : vector<16x128xf32>
    %11 = arith.negf %10 : vector<16x128xf32>
    %12 = math.exp %11 : vector<16x128xf32>
    %cst_8 = arith.constant 1.000000e+00 : f32
    %13 = vector.broadcast %cst_8 : f32 to vector<16x128xf32>
    %14 = arith.addf %13, %12 : vector<16x128xf32>
    %15 = arith.divf %13, %14 : vector<16x128xf32>
    %16 = vector.extract_strided_slice %3 {offsets = [0, 128], sizes = [16, 128], strides = [1, 1]} : vector<16x384xf32> to vector<16x128xf32>
    %17 = vector.broadcast %5 : vector<1x128xf32> to vector<16x128xf32>
    %18 = arith.addf %16, %17 : vector<16x128xf32>
    %19 = arith.negf %18 : vector<16x128xf32>
    %20 = math.exp %19 : vector<16x128xf32>
    %cst_9 = arith.constant 1.000000e+00 : f32
    %21 = vector.broadcast %cst_9 : f32 to vector<16x128xf32>
    %22 = arith.addf %21, %20 : vector<16x128xf32>
    %23 = arith.divf %21, %22 : vector<16x128xf32>
    %24 = vector.extract_strided_slice %3 {offsets = [0, 256], sizes = [16, 128], strides = [1, 1]} : vector<16x384xf32> to vector<16x128xf32>
    %25 = vector.broadcast %6 : vector<1x128xf32> to vector<16x128xf32>
    %26 = arith.addf %24, %25 : vector<16x128xf32>
    %27 = vector.broadcast %7 : vector<1x128xf32> to vector<16x128xf32>
    %28 = arith.mulf %15, %27 : vector<16x128xf32>
    %29 = arith.addf %26, %28 : vector<16x128xf32>
    %30 = math.tanh %29 : vector<16x128xf32>
    %cst_10 = arith.constant 1.000000e+00 : f32
    %31 = vector.broadcast %cst_10 : f32 to vector<16x128xf32>
    %32 = arith.subf %31, %23 : vector<16x128xf32>
    %33 = arith.mulf %32, %30 : vector<16x128xf32>
    %34 = arith.truncf %33 : vector<16x128xf32> to vector<16x128xbf16>
    %c0_11 = arith.constant 0 : index
    %c0_12 = arith.constant 0 : index
    %35 = vector.load %arg4[%c0_11, %c0_12] : memref<128x128xbf16, #tpu.memory_space<vmem>>, vector<128x128xbf16>
    %cst_13 = arith.constant dense<0.000000e+00> : vector<16x128xf32>
    %36 = tpu.matmul %34, %35, %cst_13 {dimension_numbers = #tpu.dot_dimension_numbers<[1], [0], [0], [1], [0, 0, 1, 1], [], []>} : vector<16x128xbf16>, vector<128x128xbf16>, vector<16x128xf32> -> vector<16x128xf32>
    %c0_14 = arith.constant 0 : index
    %c0_15 = arith.constant 0 : index
    %37 = vector.load %arg5[%c0_14, %c0_15] : memref<1x128xf32, #tpu.memory_space<vmem>>, vector<1x128xf32>
    %38 = vector.broadcast %37 : vector<1x128xf32> to vector<16x128xf32>
    %39 = arith.addf %36, %38 : vector<16x128xf32>
    %c0_16 = arith.constant 0 : index
    %c0_17 = arith.constant 0 : index
    %40 = vector.load %arg6[%c0_16, %c0_17] : memref<16x128xf32, #tpu.memory_space<vmem>>, vector<16x128xf32>
    tpu.vector_store %arg6[%c0_16, %c0_17], %39 {strides = array<i32>} : memref<16x128xf32, #tpu.memory_space<vmem>>, vector<16x128xf32>,
    return
  }
  func.func @transform_0(%arg0: i32) -> (i32, i32) {
    %c0_i32 = arith.constant 0 : i32
    %c0_i32_0 = arith.constant 0 : i32
    return %arg0, %c0_i32 : i32, i32
  }
  func.func @transform_1(%arg0: i32) -> (i32, i32) {
    %c0_i32 = arith.constant 0 : i32
    %c0_i32_0 = arith.constant 0 : i32
    %c0_i32_1 = arith.constant 0 : i32
    return %c0_i32, %c0_i32_0 : i32, i32
  }
  func.func @transform_2(%arg0: i32) -> (i32, i32) {
    %c0_i32 = arith.constant 0 : i32
    %c0_i32_0 = arith.constant 0 : i32
    %c0_i32_1 = arith.constant 0 : i32
    return %c0_i32, %c0_i32_0 : i32, i32
  }
  func.func @transform_3(%arg0: i32) -> (i32, i32) {
    %c0_i32 = arith.constant 0 : i32
    %c0_i32_0 = arith.constant 0 : i32
    %c0_i32_1 = arith.constant 0 : i32
    return %c0_i32, %c0_i32_0 : i32, i32
  }
  func.func @transform_4(%arg0: i32) -> (i32, i32) {
    %c0_i32 = arith.constant 0 : i32
    %c0_i32_0 = arith.constant 0 : i32
    %c0_i32_1 = arith.constant 0 : i32
    return %c0_i32, %c0_i32_0 : i32, i32
  }
  func.func @transform_5(%arg0: i32) -> (i32, i32) {
    %c0_i32 = arith.constant 0 : i32
    %c0_i32_0 = arith.constant 0 : i32
    return %arg0, %c0_i32 : i32, i32
  }
}

</mosaic_0001>

<bundles_post_ra>
// kernel: tpu_custom_call.1
= control target key start
LH: loop header
LB: loop body
LE: loop exit
PB: predicated region body
PF: predicated region fallthrough
CT: control target
= control target key end

     0   :  { %10 = vsyncpa [#allocation3], 0  ;;  %s885_s0 = inlined_call_operand.hbm [shape: f32[16,128], index: 0, kind: input, shape index: {}]   ;;  %s886_s1 = inlined_call_operand.hbm [shape: bf16[128,384], index: 1, kind: input, shape index: {}]   ;;  %s887_s2 = inlined_call_operand.hbm [shape: f32[4,128], index: 2, kind: input, shape index: {}]   ;;  %s888_s3 = inlined_call_operand.hbm [shape: bf16[128,128], index: 3, kind: input, shape index: {}]   ;;  %s889_s4 = inlined_call_operand.vmem [shape: f32[1,128], index: 4, kind: input, shape index: {}]   ;;  %s890_s5 = inlined_call_operand.hbm [shape: f32[16,128], index: 5, kind: output, shape index: {}]  }
   0x1   :  { %11 = vsyncpa [#allocation6], 0 }
   0x2   :  { %12 = vsyncpa [#allocation9], 0 }
   0x3   :  { %13 = vsyncpa [#allocation4], 0  ;;  %s797_s18 = smov [#allocation5]  }
   0x4   :  { %s31_s19 = sshll.u32 %s797_s18, 4  ;;  %s32_s19 = int_to_ptr.vmem [resolvable:$true] %s31_s19 }
   0x5   :  { %s697_s20 = scalar_lea.vmem %s32_s19, 3072  ;;  %p702_p1 = scmp.lt.s32.totalorder %s32_s19, %s32_s19 }
   0x6   :  { %p698_p0 = scmp.ne.s32.totalorder %s32_s19, %s697_s20  ;;  %p703_p2 = scmp.lt.s32.totalorder %s697_s20, %s697_s20 }
   0x8   :  { %p704_p3 = por %p703_p2, %p702_p1 }
   0xa   :  { %p705_p4 = pnand %p704_p3, %p698_p0 }
   0xc   :  { %708 = shalt.err (!%p705_p4)
}
   0xd   :  { %s798_s21 = smov 192   ;;  %s799_s22 = smov 12  }
   0xe   :  { %37 = dma.hbm_to_vmem [thread:$0]  %s886_s1, 3072, %s32_s19, [#allocation6], %s798_s21, %s798_s21, %s799_s22  }
   0xf   :  { %s800_s25 = smov [#allocation2]  }
  0x10   :  { %s19_s26 = sshll.u32 %s800_s25, 4  ;;  %s20_s26 = int_to_ptr.vmem [resolvable:$true] %s19_s26 }
  0x11   :  { %s717_s27 = scalar_lea.vmem %s20_s26, 256  ;;  %p722_p6 = scmp.lt.s32.totalorder %s20_s26, %s20_s26 }
  0x12   :  { %p718_p5 = scmp.ne.s32.totalorder %s20_s26, %s717_s27  ;;  %p723_p7 = scmp.lt.s32.totalorder %s717_s27, %s717_s27 }
  0x14   :  { %p724_p8 = por %p723_p7, %p722_p6 }
  0x16   :  { %p725_p9 = pnand %p724_p8, %p718_p5 }
  0x18   :  { %728 = shalt.err (!%p725_p9)
}
  0x19   :  { %s801_s28 = smov 128   ;;  %s802_s29 = smov 8  }
  0x1a   :  { %25 = dma.hbm_to_vmem [thread:$0]  %s885_s0, 256, %s20_s26, [#allocation3], %s801_s28, %s801_s28, %s802_s29  }
  0x1b   :  { %s803_s1 = smov [#allocation7]   ;;  %s804_s8 = smov [#allocation8]  }
  0x1c   :  { %s44_s7 = sshll.u32 %s803_s1, 4  ;;  %s53_s9 = sshll.u32 %s804_s8, 4  ;;  %s45_s7 = int_to_ptr.vmem [resolvable:$true] %s44_s7  ;;  %s54_s9 = int_to_ptr.vmem [resolvable:$true] %s53_s9 }
  0x1d   :  { %s737_s10 = scalar_lea.vmem %s45_s7, 64  ;;  %p742_p11 = scmp.lt.s32.totalorder %s45_s7, %s45_s7 }
  0x1e   :  { %p738_p10 = scmp.ne.s32.totalorder %s45_s7, %s737_s10  ;;  %p743_p12 = scmp.lt.s32.totalorder %s737_s10, %s737_s10 }
  0x20   :  { %p744_p13 = por %p743_p12, %p742_p11 }
  0x22   :  { %p745_p0 = pnand %p744_p13, %p738_p10 }
  0x24   :  { %748 = shalt.err (!%p745_p0)
}
  0x25   :  { %47 = dma.hbm_to_vmem [thread:$0]  %s887_s2, 64, %s45_s7, [#allocation6]  }
  0x26   :  { %s757_s13 = scalar_lea.vmem %s54_s9, 1024  ;;  %p762_p2 = scmp.lt.s32.totalorder %s54_s9, %s54_s9 }
  0x27   :  { %p758_p1 = scmp.ne.s32.totalorder %s54_s9, %s757_s13  ;;  %p763_p3 = scmp.lt.s32.totalorder %s757_s13, %s757_s13 }
  0x29   :  { %p764_p4 = por %p763_p3, %p762_p2 }
  0x2b   :  { %p765_p5 = pnand %p764_p4, %p758_p1 }
  0x2d   :  { %768 = shalt.err (!%p765_p5)
}
  0x2e   :  { %s805_s0 = smov 64   ;;  %s806_s14 = smov 4  }
  0x2f   :  { %59 = dma.hbm_to_vmem [thread:$0]  %s888_s3, 1024, %s54_s9, [#allocation9], %s805_s0, %s805_s0, %s806_s14  }
  0x30   :  { %789 = dma.done.wait [#allocation3], 256  }
  0x31   :  { %790 = vsyncadd [#allocation3], 4294967040 }
  0x32   :  { %791 = dma.done.wait [#allocation6], 3136  }
  0x33   :  { %792 = vsyncadd [#allocation6], 4294964160 }
  0x34   :  { %793 = dma.done.wait [#allocation9], 1024  }
  0x35   :  { %794 = vsyncadd [#allocation9], 4294966272  ;;  %v807_v0 = vmov 0.0   ;;  %v808_v1 = vmov 0   ;;  %vm809_vm0 = vmmov 0   ;;  %v75_v23 = vld [vmem:[#allocation2] sm:$0xff] }
  0x36   :  { %575 = vmatprep.subr.bf16.mxu1 %v807_v0  ;;  %270 = vmatprep.mubr.bf16.mxu0 %v808_v1  ;;  %v629_v2 = vld [vmem:[#allocation5 + $0xac] ss:$12 sps:$4 sm:$0xff]   ;;  %v631_v3 = vld [vmem:[#allocation5 + $0xa8] ss:$12 sps:$4 sm:$0xff]   ;;  %v634_v5 = vld [vmem:[#allocation5 + $0x90] ss:$12 sps:$4 sm:$0xff]  }
  0x37   :  { %591 = vmatprep.mubr.msk.bf16.mxu1 %vm809_vm0, %v807_v0  ;;  %238 = vmatprep.subr.bf16.mxu0 %v629_v2  ;;  %v632_v4 = vld [vmem:[#allocation5 + $0x94] ss:$12 sps:$4 sm:$0xff]   ;;  %v635_v6 = vld [vmem:[#allocation5 + $0x7c] ss:$12 sps:$4 sm:$0xff]   ;;  %v637_v7 = vld [vmem:[#allocation5 + $0x78] ss:$12 sps:$4 sm:$0xff]  }
  0x38   :  { %239 = vmatpush1.bf16.msra.mxu0 %v631_v3  ;;  %v638_v8 = vld [vmem:[#allocation5 + $0x64] ss:$12 sps:$4 sm:$0xff]   ;;  %v640_v9 = vld [vmem:[#allocation5 + $0x60] ss:$12 sps:$4 sm:$0xff]   ;;  %v643_v13 = vld [vmem:[#allocation5 + $0x48] ss:$12 sps:$4 sm:$0xff]  }
  0x39   :  { %240 = vmatprep.subr.bf16.mxu0 %v632_v4  ;;  %v653_v10 = vld [vmem:[#allocation5 + $0xb0] ss:$12 sps:$4 sm:$0xff]   ;;  %v641_v11 = vld [vmem:[#allocation5 + $0x4c] ss:$12 sps:$4 sm:$0xff]   ;;  %v644_v14 = vld [vmem:[#allocation5 + $0x34] ss:$12 sps:$4 sm:$0xff]  }
  0x3a   :  { %576 = vmatpush3.bf16.msra.mxu1 %v653_v10  ;;  %v654_v12 = vld [vmem:[#allocation5 + $0x98] ss:$12 sps:$4 sm:$0xff]   ;;  %v646_v15 = vld [vmem:[#allocation5 + $0x30] ss:$12 sps:$4 sm:$0xff]   ;;  %v655_v16 = vld [vmem:[#allocation5 + $0x80] ss:$12 sps:$4 sm:$0xff]  }
  0x3b   :  { %577 = vmatprep.subr.bf16.mxu1 %v807_v0  ;;  %v647_v17 = vld [vmem:[#allocation5 + $0x1c] ss:$12 sps:$4 sm:$0xff]   ;;  %v649_v19 = vld [vmem:[#allocation5 + $0x18] ss:$12 sps:$4 sm:$0xff]   ;;  %v652_v22 = vld [vmem:[#allocation5] ss:$12 sps:$4 sm:$0xff]  }
  0x3c   :  { %241 = vmatpush1.bf16.msra.mxu0 %v634_v5  ;;  %v656_v18 = vld [vmem:[#allocation5 + $0x68] ss:$12 sps:$4 sm:$0xff]   ;;  %v650_v20 = vld [vmem:[#allocation5 + $0x4] ss:$12 sps:$4 sm:$0xff]   ;;  %v76_v24 = vld [vmem:[#allocation2 + $0x8] sm:$0xff]  ;;  %s810_s17 = smov [#allocation10]  }
  0x3d   :  { %242 = vmatprep.subr.bf16.mxu0 %v635_v6  ;;  %v657_v21 = vld [vmem:[#allocation5 + $0x50] ss:$12 sps:$4 sm:$0xff]   ;;  %v658_v25 = vld [vmem:[#allocation5 + $0x38] ss:$12 sps:$4 sm:$0xff]   ;;  %v77_v26 = vpack.c.bf16 %v76_v24, %v75_v23  ;;  %v659_v27 = vld [vmem:[#allocation5 + $0x20] ss:$12 sps:$4 sm:$0xff]  }
  0x3e   :  { %578 = vmatpush3.bf16.msra.mxu1 %v654_v12  ;;  %v660_v28 = vld [vmem:[#allocation5 + $0x8] ss:$12 sps:$4 sm:$0xff]   ;;  %v661_v29 = vld [vmem:[#allocation8 + $0x38] sm:$0xff]   ;;  %v663_v31 = vld [vmem:[#allocation8 + $0x28] sm:$0xff]   ;;  %s502_s18 = sshll.u32 %s810_s17, 4  ;;  %s503_s18 = int_to_ptr.vmem [resolvable:$true] %s502_s18 }
  0x3f   :  { %579 = vmatprep.subr.bf16.mxu1 %v807_v0  ;;  %v662_v30 = vld [vmem:[#allocation8 + $0x30] sm:$0xff]   ;;  %v664_v32 = vld [vmem:[#allocation8 + $0x20] sm:$0xff]   ;;  %v665_v33 = vld [vmem:[#allocation8 + $0x18] sm:$0xff]   ;;  %s769_s19 = scalar_lea.vmem %s503_s18, 256  ;;  %p774_p7 = scmp.lt.s32.totalorder %s503_s18, %s503_s18 }
  0x40   :  { %243 = vmatpush1.bf16.msra.mxu0 %v637_v7  ;;  %v666_v34 = vld [vmem:[#allocation8 + $0x10] sm:$0xff]   ;;  %v667_v35 = vld [vmem:[#allocation8 + $0x8] sm:$0xff]   ;;  %v668_v36 = vld [vmem:[#allocation8] sm:$0xff]   ;;  %p770_p6 = scmp.ne.s32.totalorder %s503_s18, %s769_s19  ;;  %p775_p8 = scmp.lt.s32.totalorder %s769_s19, %s769_s19 }
  0x41   :  { %244 = vmatprep.subr.bf16.mxu0 %v638_v8  ;;  %v540_v37 = vld [vmem:[#allocation7] ss:$0 sm:$0xff]  ;;  %v543_v44 = vld [vmem:[#allocation7 + $0x1] ss:$0 sm:$0xff]  ;;  %v546_v59 = vld [vmem:[#allocation7 + $0x2] ss:$0 sm:$0xff] }
  0x42   :  { %580 = vmatpush3.bf16.msra.mxu1 %v655_v16  ;;  %v547_v62 = vld [vmem:[#allocation7 + $0x3] ss:$0 sm:$0xff]  ;;  %p776_p9 = por %p775_p8, %p774_p7 }
  0x43   :  { %581 = vmatprep.subr.bf16.mxu1 %v807_v0 }
  0x44   :  { %245 = vmatpush1.bf16.msra.mxu0 %v640_v9  ;;  %p777_p10 = pnand %p776_p9, %p770_p6 }
  0x45   :  { %246 = vmatprep.subr.bf16.mxu0 %v641_v11 }
  0x46   :  { %582 = vmatpush3.bf16.msra.mxu1 %v656_v18  ;;  %v548_v18 = vld [vmem:[%s889_s4] ss:$0 sm:$0xff] }
  0x47   :  { %583 = vmatprep.subr.bf16.mxu1 %v807_v0 }
  0x48   :  { %247 = vmatpush1.bf16.msra.mxu0 %v643_v13 }
  0x49   :  { %248 = vmatprep.subr.bf16.mxu0 %v644_v14 }
  0x4a   :  { %584 = vmatpush3.bf16.msra.mxu1 %v657_v21 }
  0x4b   :  { %585 = vmatprep.subr.bf16.mxu1 %v807_v0 }
  0x4c   :  { %249 = vmatpush1.bf16.msra.mxu0 %v646_v15 }
  0x4d   :  { %250 = vmatprep.subr.bf16.mxu0 %v647_v17 }
  0x4e   :  { %586 = vmatpush3.bf16.msra.mxu1 %v658_v25 }
  0x4f   :  { %587 = vmatprep.subr.bf16.mxu1 %v807_v0 }
  0x50   :  { %251 = vmatpush1.bf16.msra.mxu0 %v649_v19 }
  0x51   :  { %252 = vmatprep.subr.bf16.mxu0 %v650_v20 }
  0x52   :  { %588 = vmatpush3.bf16.msra.mxu1 %v659_v27 }
  0x53   :  { %589 = vmatprep.subr.bf16.mxu1 %v807_v0 }
  0x54   :  { %253 = vmatpush1.bf16.msra.mxu0 %v652_v22 }
  0x55   :  { %595 = vmatprep.subr.bf16.mxu0 %v807_v0 }
  0x56   :  { %590 = vmatpush3.bf16.msra.mxu1 %v660_v28 }
  0x57   :  { %271 = vmatmul.mubr.bf16.vlgmr.msra.gmra.mxu0 %v77_v26 }
  0x58   :  { %611 = vmatprep.mubr.msk.bf16.mxu0 %vm809_vm0, %v807_v0  ;;  %596 = vmatpush3.bf16.msra.mxu0 %v661_v29 }
  0x59   :  { %592 = vmatmul.mubr.bf16.vlgmr.msra.gmra.mxu1 %v77_v26  ;;  %597 = vmatprep.subr.bf16.mxu0 %v807_v0 }
  0x5c   :  { %598 = vmatpush3.bf16.msra.mxu0 %v662_v30 }
  0x5d   :  { %599 = vmatprep.subr.bf16.mxu0 %v807_v0 }
  0x60   :  { %600 = vmatpush3.bf16.msra.mxu0 %v663_v31 }
  0x61   :  { %601 = vmatprep.subr.bf16.mxu0 %v807_v0 }
  0x64   :  { %602 = vmatpush3.bf16.msra.mxu0 %v664_v32 }
  0x65   :  { %603 = vmatprep.subr.bf16.mxu0 %v807_v0 }
  0x68   :  { %604 = vmatpush3.bf16.msra.mxu0 %v665_v33 }
  0x69   :  { %605 = vmatprep.subr.bf16.mxu0 %v807_v0 }
  0x6c   :  { %606 = vmatpush3.bf16.msra.mxu0 %v666_v34 }
  0x6d   :  { %607 = vmatprep.subr.bf16.mxu0 %v807_v0 }
  0x70   :  { %608 = vmatpush3.bf16.msra.mxu0 %v667_v35 }
  0x71   :  { %609 = vmatprep.subr.bf16.mxu0 %v807_v0 }
  0x74   :  { %610 = vmatpush3.bf16.msra.mxu0 %v668_v36 }
 0x117   :  { %v272_v38 = vpop.f32.mrf.mxu0 }
 0x118   :  { %v330_v39 = vadd.f32 %v540_v37, %v272_v38 }
 0x119   :  { %v274_v40 = vpop.f32.mrf.mxu0  ;;  %v315_v48 = vpop.f32.mrf.mxu1 }
 0x11a   :  { %v541_v41 = vmul.f32 -1.442695, %v330_v39  ;;  %v348_v47 = vadd.f32 %v543_v44, %v274_v40  ;;  %v366_v63 = vadd.f32 %v546_v59, %v315_v48 }
 0x11b   :  { %v276_v42 = vpop.f32.mrf.mxu0  ;;  %v593_v50 = vpop.f32.mrf.mxu1 }
 0x11c   :  { %669 = vpow2.f32 %v541_v41  ;;  %v331_v43 = vadd.f32 %v540_v37, %v276_v42  ;;  %v544_v51 = vmul.f32 -1.442695, %v348_v47 }
 0x11d   :  { %v278_v46 = vpop.f32.mrf.mxu0  ;;  %v318_v52 = vpop.f32.mrf.mxu1 }
 0x11e   :  { %v542_v45 = vmul.f32 -1.442695, %v331_v43  ;;  %v349_v49 = vadd.f32 %v543_v44, %v278_v46  ;;  %v367_v6 = vadd.f32 %v546_v59, %v318_v52 }
 0x11f   :  { %v594_v54 = vpop.f32.mrf.mxu1 }
 0x120   :  { %671 = vpow2.f32 %v542_v45  ;;  %v545_v53 = vmul.f32 -1.442695, %v349_v49 }
 0x121   :  { %673 = vpow2.f32 %v544_v51 }
 0x122   :  { %675 = vpow2.f32 %v545_v53 }
 0x129   :  { %v670_v55 = vpop.eup %669 }
 0x12a   :  { %v338_v56 = vadd.f32 1.0, %v670_v55 }
 0x12c   :  { %677 = vrcp.f32 %v338_v56 }
 0x12d   :  { %v672_v57 = vpop.eup %671 }
 0x12e   :  { %v339_v58 = vadd.f32 1.0, %v672_v57  ;;  %v674_v60 = vpop.eup %673 }
 0x12f   :  { %v676_v61 = vpop.eup %675  ;;  %v356_v1 = vadd.f32 1.0, %v674_v60 }
 0x130   :  { %679 = vrcp.f32 %v339_v58  ;;  %v357_v2 = vadd.f32 1.0, %v676_v61 }
 0x131   :  { %681 = vrcp.f32 %v356_v1 }
 0x132   :  { %683 = vrcp.f32 %v357_v2 }
 0x139   :  { %v678_v0 = vpop.eup %677 }
 0x13a   :  { %v372_v3 = vmul.f32 %v678_v0, %v547_v62 }
 0x13c   :  { %v374_v4 = vadd.f32 %v372_v3, %v366_v63 }
 0x13d   :  { %v680_v5 = vpop.eup %679 }
 0x13e   :  { %v373_v7 = vmul.f32 %v680_v5, %v547_v62  ;;  %685 = vtanh.f32 %v374_v4  ;;  %v682_v9 = vpop.eup %681 }
 0x13f   :  { %v684_v10 = vpop.eup %683  ;;  %v378_v12 = vsub.f32 1.0, %v682_v9 }
 0x140   :  { %v375_v8 = vadd.f32 %v373_v7, %v367_v6  ;;  %v379_v13 = vsub.f32 1.0, %v684_v10 }
 0x142   :  { %687 = vtanh.f32 %v375_v8 }
 0x14b   :  { %v686_v11 = vpop.eup %685 }
 0x14c   :  { %v380_v15 = vmul.f32 %v686_v11, %v378_v12 }
 0x14f   :  { %v688_v14 = vpop.eup %687 }
 0x150   :  { %v381_v16 = vmul.f32 %v688_v14, %v379_v13 }
 0x152   :  { %v382_v17 = vpack.c.bf16 %v381_v16, %v380_v15 }
 0x154   :  { %612 = vmatmul.mubr.bf16.vlgmr.msra.gmra.mxu0 %v382_v17 }
 0x214   :  { %v488_v19 = vpop.f32.mrf.mxu0 }
 0x215   :  { %v489_v20 = vadd.f32 %v548_v18, %v488_v19 }
 0x216   :  { %v613_v21 = vpop.f32.mrf.mxu0 }
 0x217   :  { %495 = vst [vmem:[#allocation10] sm:$0xff] %v489_v20 }
 0x218   :  { %v491_v22 = vpop.f32.mrf.mxu0 }
 0x219   :  { %v492_v23 = vadd.f32 %v548_v18, %v491_v22 }
 0x21a   :  { %v614_v24 = vpop.f32.mrf.mxu0 }
 0x21b   :  { %496 = vst [vmem:[#allocation10 + $0x8] sm:$0xff] %v492_v23 }
 0x21c   :  { %780 = shalt.err (!%p777_p10)
}
 0x21d   :  { %508 = dma.vmem_to_hbm [thread:$0]  %s503_s18, 256, %s890_s5, [#allocation4], %s801_s28, %s801_s28, %s802_s29  }
 0x21e   :  { %795 = dma.done.wait [#allocation4], 256  }
 0x21f   :  { %796 = vsyncadd [#allocation4], 4294967040 }
 0x220   :  { %512 = vsyncpa [#allocation3], 1 }
 0x221   :  { %513 = vsyncpa [#allocation6], 1 }
 0x222   :  { %514 = vsyncpa [#allocation9], 1 }
 0x223   :  { %515 = vsyncpa [#allocation4], 1 }

</bundles_post_ra>
